<compile_context>
chip_gen: v6e
topology: v6e:2x2x1
jax: 0.10.0
libtpu: 0.0.40
codegen_flags: <defaults>
</compile_context>

<pallas_src>
import functools
import math
from collections import namedtuple

import numpy as np
import jax
import jax.numpy as jnp
from jax.experimental import pallas as pl
from jax.experimental.pallas import tpu as pltpu

# ----------------------------------------------------------------------------
# Synthetic "grammar": primitives with fixed arities (deterministic, in-script)
# ----------------------------------------------------------------------------
# (name, numberOfArguments) — mirrors len(prim.infer().functionArguments())
PRIMITIVES = [("map", 2), ("fold", 3), ("cons", 2), ("empty", 0), ("incr", 1)]
NUM_PRODUCTIONS = len(PRIMITIVES)          # len(grammar)
G = NUM_PRODUCTIONS + 1                    # len(grammar) + 1  (+1 for Index / logVariable)

# Build library exactly like the torch __init__
LIBRARY = {}
N_GRAMMARS = 0
for name, arity in PRIMITIVES:
    LIBRARY[name] = list(range(N_GRAMMARS, N_GRAMMARS + arity))
    N_GRAMMARS += arity
N_GRAMMARS += 2                            # + noParent + variableParent

INPUT_DIM = 32
N_OUT = N_GRAMMARS * G                     # 60
LANE = 128
SUBLANE = 8
N_PAD = ((N_OUT + LANE - 1) // LANE) * LANE   # 128: lane-dense output width
MAX_TILE = 4096                            # keeps tiles ~5 MiB double-buffered

Grammar = namedtuple("Grammar", ["logVariable", "logProductions"])
ContextualGrammar = namedtuple("ContextualGrammar", ["noParent", "variableParent", "library"])


def _round_up(n, m):
    return ((n + m - 1) // m) * m


def _bucket_rows(b):
    """Bucket the padded batch size: next pow2 (min 8) up to MAX_TILE, then
    multiples of MAX_TILE. Bounds the set of kernel shapes ever compiled."""
    if b <= SUBLANE:
        return SUBLANE
    p = 1 << (b - 1).bit_length()
    if p <= MAX_TILE:
        return p
    return _round_up(b, MAX_TILE)


def _choose_tile(bp):
    """Single grid step for small/medium batches; >=2 balanced tiles on large
    batches so both v7x TensorCores get work. bp always divides by the result."""
    if bp <= 1024:
        return bp
    if bp <= 2 * MAX_TILE:
        return bp // 2
    return MAX_TILE


# ----------------------------------------------------------------------------
# Pallas kernel: y = x @ W_pad + b_pad   (the nn.Linear forward, lane-padded)
# ----------------------------------------------------------------------------
def _linear_kernel(x_ref, w_ref, b_ref, o_ref):
    # x_ref: (TM, D), w_ref: (D, N_PAD), b_ref: (1, N_PAD), o_ref: (TM, N_PAD)
    o_ref[...] = (
        jnp.dot(x_ref[...], w_ref[...], preferred_element_type=jnp.float32)
        + b_ref[...]
    )


def _linear_pallas(x_pad, w_pad, b_pad, tm):
    """x_pad: (bp, D) f32 with bp % tm == 0; w_pad: (D, N_PAD); b_pad: (1, N_PAD)."""
    bp, d = x_pad.shape
    n_pad = w_pad.shape[1]
    grid = (bp // tm,)
    return pl.pallas_call(
        _linear_kernel,
        out_shape=jax.ShapeDtypeStruct((bp, n_pad), jnp.float32),
        grid_spec=pltpu.PrefetchScalarGridSpec(
            num_scalar_prefetch=0,
            grid=grid,
            in_specs=[
                pl.BlockSpec((tm, d), lambda i: (i, 0)),        # batch tile of x
                pl.BlockSpec((d, n_pad), lambda i: (0, 0)),     # resident weight
                pl.BlockSpec((1, n_pad), lambda i: (0, 0)),     # resident bias
            ],
            out_specs=pl.BlockSpec((tm, n_pad), lambda i: (i, 0)),
        ),
        compiler_params=pltpu.CompilerParams(
            dimension_semantics=("parallel",),                  # shards batch tiles on v7x
        ),
        cost_estimate=pl.CostEstimate(
            flops=2 * bp * d * n_pad,
            transcendentals=0,
            bytes_accessed=4 * (bp * d + d * n_pad + n_pad + bp * n_pad),
        ),
    )(x_pad, w_pad, b_pad)


# Fully fused device path: pad -> pallas matmul -> lane slice -> reshape.
# One dispatch per call; cache is keyed on (B, bp, tm) with bp/tm bucketed.
@functools.partial(jax.jit, static_argnames=("bp", "tm"))
def _fused_log_productions(xs2d, w_pad, b_pad, *, bp, tm):
    b, d = xs2d.shape
    xs_pad = jnp.zeros((bp, d), jnp.float32).at[:b].set(xs2d.astype(jnp.float32))
    out_pad = _linear_pallas(xs_pad, w_pad, b_pad, tm)          # (bp, N_PAD)
    # Slice padded lanes/rows off and do the view-style reshape inside the jit.
    return out_pad[:b, :N_OUT].reshape(b, N_GRAMMARS, G)


# ----------------------------------------------------------------------------
# Module wrapper
# ----------------------------------------------------------------------------
class ContextualGrammarNetworkPallas:
    def __init__(self, input_dim, key):
        self.input_dim = input_dim
        self.n_grammars = N_GRAMMARS
        self.G = G
        self.library = LIBRARY
        # torch nn.Linear default init: U(-1/sqrt(in), 1/sqrt(in)) for W and b
        k_w, k_b = jax.random.split(key)
        bound = 1.0 / math.sqrt(input_dim)
        # torch weight is (out, in); we keep the transposed (in, out) layout
        w_t = jax.random.uniform(k_w, (input_dim, N_OUT), jnp.float32, -bound, bound)
        b = jax.random.uniform(k_b, (1, N_OUT), jnp.float32, -bound, bound)
        # Lane-pad to N_PAD (zero columns: exact under the [:, :N_OUT] slice)
        # and commit to device once so repeated calls reuse committed arrays.
        self.w_pad = jax.device_put(
            jnp.zeros((input_dim, N_PAD), jnp.float32).at[:, :N_OUT].set(w_t))
        self.b_pad = jax.device_put(
            jnp.zeros((1, N_PAD), jnp.float32).at[:, :N_OUT].set(b))
        # Unpadded copies kept only for the reference check.
        self.w_t = w_t
        self.b = b

    # ---- device-side linear, shared by forward + batched path ----
    def _log_productions(self, xs2d):
        B = xs2d.shape[0]
        bp = _bucket_rows(B)
        tm = _choose_tile(bp)
        return _fused_log_productions(xs2d, self.w_pad, self.b_pad, bp=bp, tm=tm)

    # ---- host-side bookkeeping (no tensor compute) ----
    @staticmethod
    def _grammar_from_vector_np(row_np):
        # Grammar(logVariable=row[-1], productions[k]=row[k]) — built from NumPy.
        return Grammar(
            logVariable=row_np[-1].reshape(1),
            logProductions=[row_np[k].reshape(1) for k in range(NUM_PRODUCTIONS)],
        )

    def forward(self, x):
        assert x.ndim == 1, "contextual grammar doesn't currently support batching"
        # TODO(synk): at B=1 the launch + device_get sync dominates the ~100 ns of
        # math; callers that care should batch multiple forward()s before dispatch.
        allVars = self._log_productions(x.reshape(1, self.input_dim))[0]  # (n_grammars, G)
        # One bulk transfer; grammar objects built from NumPy scalars.
        allVars_np = np.asarray(jax.device_get(allVars))
        gv = self._grammar_from_vector_np
        cg = ContextualGrammar(
            noParent=gv(allVars_np[-1]),
            variableParent=gv(allVars_np[-2]),
            library={prim: [gv(allVars_np[j]) for j in js]
                     for prim, js in self.library.items()},
        )
        return cg, allVars

    def batched_log_productions(self, xs):
        """Device part of batchedLogLikelihoods: self.network(xs).view(B, n_grammars, G)."""
        assert xs.ndim == 2 and xs.shape[1] == self.input_dim
        return self._log_productions(xs)


# ----------------------------------------------------------------------------
# Main
# ----------------------------------------------------------------------------
if __name__ == "__main__":
    key = jax.random.PRNGKey(0)
    k_param, k_x, k_xs, k_xs2 = jax.random.split(key, 4)

    net = ContextualGrammarNetworkPallas(INPUT_DIM, k_param)
    x = jax.random.normal(k_x, (INPUT_DIM,), jnp.float32)

    # --- single-vector forward (the module's forward) ---
    cg, allVars = net.forward(x)
    allVars = jax.block_until_ready(allVars)

    ref = (x.reshape(1, -1) @ net.w_t + net.b).reshape(N_GRAMMARS, G)
    assert allVars.shape == (N_GRAMMARS, G)
    assert jnp.allclose(allVars, ref, atol=1e-5, rtol=1e-5), "mismatch vs reference"

    # Structural output (host-side bookkeeping mirrored from torch)
    assert len(cg.library["fold"]) == 3
    assert cg.noParent.logVariable.shape == (1,)
    assert len(cg.variableParent.logProductions) == NUM_PRODUCTIONS

    # --- batched path (the linear part of batchedLogLikelihoods) ---
    B = 4
    xs = jax.random.normal(k_xs, (B, INPUT_DIM), jnp.float32)
    logProd = jax.block_until_ready(net.batched_log_productions(xs))
    ref_b = (xs @ net.w_t + net.b).reshape(B, N_GRAMMARS, G)
    assert logProd.shape == (B, N_GRAMMARS, G)
    assert jnp.allclose(logProd, ref_b, atol=1e-5, rtol=1e-5), "batched mismatch"

    # A second batch size hitting a different bucket (bp=32, still grid=1).
    B2 = 20
    xs2 = jax.random.normal(k_xs2, (B2, INPUT_DIM), jnp.float32)
    logProd2 = jax.block_until_ready(net.batched_log_productions(xs2))
    ref_b2 = (xs2 @ net.w_t + net.b).reshape(B2, N_GRAMMARS, G)
    assert logProd2.shape == (B2, N_GRAMMARS, G)
    assert jnp.allclose(logProd2, ref_b2, atol=1e-5, rtol=1e-5), "batched mismatch (B2)"

    # TODO(synk): the uses/mask/normalizer bookkeeping of batchedLogLikelihoods is
    # pure host-side Python over grammar summaries (no tensor compute) and is not
    # translated to Pallas.
    print("KERNEL_OK")
</pallas_src>

<mosaic_0001>
module attributes {stable_mosaic.version = 11 : i64} {
  func.func @_linear_kernel(%arg0: i32, %arg1: memref<8x32xf32, #tpu.memory_space<vmem>>, %arg2: memref<32x128xf32, #tpu.memory_space<vmem>>, %arg3: memref<1x128xf32, #tpu.memory_space<vmem>>, %arg4: memref<8x128xf32, #tpu.memory_space<vmem>>) attributes {dimension_semantics = [#tpu.dimension_semantics<parallel>], iteration_bounds = array<i64: 1>, scalar_prefetch = 0 : i64, scratch_operands = 0 : i64, tpu.core_type = #tpu.core_type<tc>, window_params = [{transform_indices = @transform_0, window_bounds = array<i64: 8, 32>}, {pipeline_mode = #tpu.pipeline_mode<synchronous>, transform_indices = @transform_1, window_bounds = array<i64: 32, 128>}, {pipeline_mode = #tpu.pipeline_mode<synchronous>, transform_indices = @transform_2, window_bounds = array<i64: 1, 128>}, {transform_indices = @transform_3, window_bounds = array<i64: 8, 128>}]} {
    %c0 = arith.constant 0 : index
    %c0_0 = arith.constant 0 : index
    %0 = vector.load %arg1[%c0, %c0_0] : memref<8x32xf32, #tpu.memory_space<vmem>>, vector<8x32xf32>
    %c0_1 = arith.constant 0 : index
    %c0_2 = arith.constant 0 : index
    %1 = vector.load %arg2[%c0_1, %c0_2] : memref<32x128xf32, #tpu.memory_space<vmem>>, vector<32x128xf32>
    %cst = arith.constant dense<0.000000e+00> : vector<8x128xf32>
    %2 = tpu.matmul %0, %1, %cst {dimension_numbers = #tpu.dot_dimension_numbers<[1], [0], [0], [1], [0, 0, 1, 1], [], []>} : vector<8x32xf32>, vector<32x128xf32>, vector<8x128xf32> -> vector<8x128xf32>
    %c0_3 = arith.constant 0 : index
    %c0_4 = arith.constant 0 : index
    %3 = vector.load %arg3[%c0_3, %c0_4] : memref<1x128xf32, #tpu.memory_space<vmem>>, vector<1x128xf32>
    %4 = vector.broadcast %3 : vector<1x128xf32> to vector<8x128xf32>
    %5 = arith.addf %2, %4 : vector<8x128xf32>
    %c0_5 = arith.constant 0 : index
    %c0_6 = arith.constant 0 : index
    %6 = vector.load %arg4[%c0_5, %c0_6] : memref<8x128xf32, #tpu.memory_space<vmem>>, vector<8x128xf32>
    tpu.vector_store %arg4[%c0_5, %c0_6], %5 {strides = array<i32>} : memref<8x128xf32, #tpu.memory_space<vmem>>, vector<8x128xf32>,
    return
  }
  func.func @transform_0(%arg0: i32) -> (i32, i32) {
    %c0_i32 = arith.constant 0 : i32
    %c0_i32_0 = arith.constant 0 : i32
    return %arg0, %c0_i32 : i32, i32
  }
  func.func @transform_1(%arg0: i32) -> (i32, i32) {
    %c0_i32 = arith.constant 0 : i32
    %c0_i32_0 = arith.constant 0 : i32
    %c0_i32_1 = arith.constant 0 : i32
    return %c0_i32, %c0_i32_0 : i32, i32
  }
  func.func @transform_2(%arg0: i32) -> (i32, i32) {
    %c0_i32 = arith.constant 0 : i32
    %c0_i32_0 = arith.constant 0 : i32
    %c0_i32_1 = arith.constant 0 : i32
    return %c0_i32, %c0_i32_0 : i32, i32
  }
  func.func @transform_3(%arg0: i32) -> (i32, i32) {
    %c0_i32 = arith.constant 0 : i32
    %c0_i32_0 = arith.constant 0 : i32
    return %arg0, %c0_i32 : i32, i32
  }
}

</mosaic_0001>

<bundles_post_ra>
// kernel: _fused_log_productions.1
= control target key start
LH: loop header
LB: loop body
LE: loop exit
PB: predicated region body
PF: predicated region fallthrough
CT: control target
= control target key end

     0   :  { %8 = vsyncpa [#allocation3], 0  ;;  %s165_s12 = smov [#allocation2]   ;;  %s202_s0 = inlined_call_operand.vmem [shape: f32[8,32], index: 0, kind: input, shape index: {}]   ;;  %s203_s1 = inlined_call_operand.hbm [shape: f32[32,128], index: 1, kind: input, shape index: {}]   ;;  %s204_s2 = inlined_call_operand.vmem [shape: f32[1,128], index: 2, kind: input, shape index: {}]   ;;  %s205_s3 = inlined_call_operand.vmem [shape: f32[8,128], index: 3, kind: output, shape index: {}]  }
   0x1   :  { %s16_s13 = sshll.u32 %s165_s12, 4  ;;  %s17_s13 = int_to_ptr.vmem [resolvable:$true] %s16_s13 }
   0x2   :  { %s151_s14 = scalar_lea.vmem %s17_s13, 512  ;;  %p156_p1 = scmp.lt.s32.totalorder %s17_s13, %s17_s13 }
   0x3   :  { %p152_p0 = scmp.ne.s32.totalorder %s17_s13, %s151_s14  ;;  %p157_p2 = scmp.lt.s32.totalorder %s151_s14, %s151_s14 }
   0x5   :  { %p158_p3 = por %p157_p2, %p156_p1 }
   0x7   :  { %p159_p4 = pnand %p158_p3, %p152_p0 }
   0x9   :  { %162 = shalt.err (!%p159_p4)
}
   0xa   :  { %s166_s15 = smov 128   ;;  %s167_s16 = smov 8  }
   0xb   :  { %22 = dma.hbm_to_vmem [thread:$0]  %s203_s1, 512, %s17_s13, [#allocation3], %s166_s15, %s166_s15, %s167_s16  }
   0xc   :  { %163 = dma.done.wait [#allocation3], 512  }
   0xd   :  { %164 = vsyncadd [#allocation3], 4294966784  ;;  %v168_v0 = vmov 0.0   ;;  %vm169_vm0 = vmmov 0   ;;  %v32_v1 = vld [vmem:[#allocation2 + $0x18] sm:$0xff]  ;;  %v31_v2 = vld [vmem:[#allocation2 + $0x10] sm:$0xff] }
   0xe   :  { %127 = vmatprep.subr.mxu0 %v168_v0  ;;  %135 = vmatprep.mubr.msk.f32.mxu0 %vm169_vm0, %v168_v0  ;;  %v30_v3 = vld [vmem:[#allocation2 + $0x8] sm:$0xff]  ;;  %v29_v4 = vld [vmem:[#allocation2] sm:$0xff]  ;;  %vm40_vm1 = vcmask 261120  }
   0xf   :  { %128 = vmatpush3.msra.mxu0 %v32_v1  ;;  %v28_v5 = vld [vmem:[%s202_s0] sm:$0xff] }
  0x10   :  { %129 = vmatprep.subr.mxu0 %v168_v0  ;;  %v120_v6 = vld [vmem:[%s204_s2] ss:$0 sm:$0xff] }
  0x11   :  { %130 = vmatpush3.msra.mxu0 %v31_v2 }
  0x12   :  { %131 = vmatprep.subr.mxu0 %v168_v0 }
  0x13   :  { %132 = vmatpush3.msra.mxu0 %v30_v3 }
  0x14   :  { %133 = vmatprep.subr.mxu0 %v168_v0 }
  0x15   :  { %134 = vmatpush3.msra.mxu0 %v29_v4 }
  0x16   :  { %136 = vmatmul.mubr.msk.f32.vlgmr.msra.gmra.mxu0 %vm40_vm1, %v28_v5 }
  0xd6   :  { %v110_v7 = vpop.f32.mrf.mxu0 }
  0xd7   :  { %v111_v8 = vadd.f32 %v120_v6, %v110_v7 }
  0xd8   :  { %v137_v9 = vpop.f32.mrf.mxu0 }
  0xd9   :  { %114 = vst [vmem:[%s205_s3] sm:$0xff] %v111_v8 }
  0xda   :  { %119 = vsyncpa [#allocation3], 1 }

</bundles_post_ra>
